<compile_context>
chip_gen: v7x
topology: tpu7x:2x2x1
jax: 0.10.0
libtpu: 0.0.40
codegen_flags: <defaults>
</compile_context>

<pallas_src>
import jax
import jax.numpy as jnp
from jax.experimental import pallas as pl
from jax.experimental.pallas import tpu as pltpu


def _vmem_capacity_bytes():
    """Physical VMEM per TensorCore (128 MiB v5e/v6e, 64 MiB v7x); safe fallback."""
    try:
        cap = getattr(pltpu.get_tpu_info(), "vmem_capacity_bytes", None)
        if cap:
            return int(cap)
    except Exception:
        pass
    return 64 << 20


def _choose_batch_block(N, W, D, n_branch, Co, budget_bytes):
    """Batch rows per grid step, sized from a VMEM working-set budget.

    For N >= 16 the grid always has >= 2 steps so the "parallel" batch axis
    can be split across both TensorCores on v7x (costs one extra ~0.35us step
    on v5e/v6e, negligible).  Tiny batches run as a single full-array block,
    which keeps the (8,128) block-shape rule trivially satisfied.
    """
    if N < 16:
        return N
    nBD, nBCo = n_branch * D, n_branch * Co
    # Per batch row: bf16 emb double-buffer, one live shifted-tap copy per conv
    # stage, f32 conv1/conv2 accumulators + activations, bf16 copy of l1.
    # +50% slack for compiler temporaries.
    per_row = W * (2 * 2 * D + 2 * D + 2 * nBD + (4 + 4 + 2) * nBD + (4 + 4) * nBCo)
    per_row = per_row * 3 // 2
    cap = max(8, budget_bytes // max(per_row, 1))
    steps = max(-(-N // cap), 2)          # >= 2 grid steps once N is big enough
    nb = -(-N // steps)
    nb = -(-nb // 8) * 8                  # sublane-aligned output blocks
    return min(N, nb)


def _deep_cnn_kernel(emb_ref, w1f_ref, b1c_ref, w2f_ref, b2c_ref,
                     fc1_w_ref, fc1_b_ref, fc2_w_ref, fc2_b_ref, out_ref):
    """Fused DEEP_CNN forward for one batch block.

    emb_ref : (NB, W, D) bf16 embeddings for NB batch rows.
    w1f_ref : (Kmax, D, nB*D) bf16   fused conv1 weights (branches on lanes).
    w2f_ref : (Kmax, nB*D, nB*Co) bf16 block-diagonal fused conv2 weights.
    b1c/b2c : f32 fused biases; fc*: bf16 weights, f32 biases.
    All intermediates stay in registers / compiler-managed VMEM.
    """
    x3 = emb_ref[...]                      # (NB, W, D) bf16
    NB, W, _ = x3.shape
    Kmax = w1f_ref.shape[0]
    padmax = Kmax // 2
    M = NB * W

    def conv_same(a3, w_ref):
        """'Same' conv over the sequence as Kmax shifted-window matmuls.

        a3: (NB, W, Cin) bf16; w_ref: (Kmax, Cin, Cout) bf16 (taps outside a
        narrower branch kernel are zero).  Per-sample zero padding keeps taps
        from leaking across samples.  Each shifted window is consumed by its
        matmul immediately — no (M, K*Cin) im2col monolith, no lane concats.
        """
        Cin = a3.shape[2]
        Cout = w_ref.shape[2]
        z = jnp.zeros((NB, padmax, Cin), a3.dtype)
        ap = jnp.concatenate([z, a3, z], axis=1)          # (NB, W + 2*padmax, Cin)
        acc = jnp.zeros((M, Cout), jnp.float32)
        for k in range(Kmax):
            tap = ap[:, k:k + W, :].reshape(M, Cin)
            acc += jnp.dot(tap, w_ref[k], preferred_element_type=jnp.float32)
        return acc

    # ---- conv1: all branches fused along the output-lane axis ----
    l1 = jnp.maximum(conv_same(x3, w1f_ref) + b1c_ref[...], 0.0)      # (M, nB*D) f32

    # ---- conv2: block-diagonal fused weights ----
    l1_bf = l1.astype(jnp.bfloat16).reshape(NB, W, l1.shape[1])
    l2 = jnp.maximum(conv_same(l1_bf, w2f_ref) + b2c_ref[...], 0.0)   # (M, nB*Co) f32

    # ---- global max-pool over the sequence (F.max_pool1d(i, i.size(2))) ----
    feat = jnp.max(l2.reshape(NB, W, l2.shape[1]), axis=1)            # (NB, nB*Co)

    # Dropout is identity in eval/inference mode.
    # TODO(synk): train-mode stochastic dropout masking not implemented.
    h1 = jnp.dot(jnp.tanh(feat).astype(jnp.bfloat16), fc1_w_ref[...],
                 preferred_element_type=jnp.float32) + fc1_b_ref[...]
    out_ref[...] = (jnp.dot(jnp.tanh(h1).astype(jnp.bfloat16), fc2_w_ref[...],
                            preferred_element_type=jnp.float32) + fc2_b_ref[...])


def _fuse_branch_weights(params, D, Co):
    """Zero-pad every branch's conv weights to Kmax taps (centered), concatenate
    conv1 outputs along lanes and block-diagonal conv2, so all branches share
    one matmul per tap.  Weights are cast to bf16 once here."""
    Ks = params["Ks"]
    n = len(Ks)
    Kmax = max(Ks)
    w1f = jnp.zeros((Kmax, D, n * D), jnp.float32)
    b1c = jnp.zeros((1, n * D), jnp.float32)
    w2f = jnp.zeros((Kmax, n * D, n * Co), jnp.float32)
    b2c = jnp.zeros((1, n * Co), jnp.float32)
    for b, (K, p) in enumerate(zip(Ks, params["branches"])):
        o = (Kmax - K) // 2                       # center the narrower kernel
        w1f = w1f.at[o:o + K, :, b * D:(b + 1) * D].set(p["w1"])
        b1c = b1c.at[:, b * D:(b + 1) * D].set(p["b1"])
        w2f = w2f.at[o:o + K, b * D:(b + 1) * D, b * Co:(b + 1) * Co].set(p["w2"])
        b2c = b2c.at[:, b * Co:(b + 1) * Co].set(p["b2"])
    return w1f.astype(jnp.bfloat16), b1c, w2f.astype(jnp.bfloat16), b2c, Kmax


def deep_cnn_forward(x, params):
    """x: (N, W) int32 token ids -> (N, C) f32 logits."""
    Ks = params["Ks"]
    for K in Ks:
        assert K % 2 == 1, "only odd kernel sizes give 'same'-length conv output"

    embed = params["embed"]                       # (V, D)
    _, D = embed.shape
    N, W = x.shape
    Co = params["branches"][0]["w2"].shape[2]
    F, H = params["fc1_w"].shape
    C = params["fc2_w"].shape[1]
    assert F == len(Ks) * Co

    # Embedding gather once, stored in bf16 (halves the HBM round trip of the
    # gathered activations vs f32); shared by all branches.
    # TODO(synk): for large vocabularies gather in-kernel (scalar-prefetch ids +
    # per-row DMA from `embed` kept in memory_space=pl.ANY) instead of
    # materializing (N, W, D) in HBM.
    emb = embed.astype(jnp.bfloat16)[x]           # (N, W, D) bf16

    vmem_cap = _vmem_capacity_bytes()             # 128 MiB v5e/v6e, 64 MiB v7x
    vmem_limit = min(vmem_cap * 3 // 4, 96 << 20)
    NB = _choose_batch_block(N, W, D, len(Ks), Co, vmem_limit // 2)
    n_steps = -(-N // NB)
    N_pad = n_steps * NB
    if N_pad != N:                                # guards prime / odd batch sizes
        emb = jnp.pad(emb, ((0, N_pad - N), (0, 0), (0, 0)))

    w1f, b1c, w2f, b2c, Kmax = _fuse_branch_weights(params, D, Co)
    nBD, nBCo = len(Ks) * D, len(Ks) * Co

    in_specs = [
        # Batch-blocked embeddings.  If a profile shows exposed DMA at large D,
        # add pipeline_mode=pl.Buffered(3) here.
        pl.BlockSpec((NB, W, D), lambda i: (i, 0, 0)),
        # Constant-index weight blocks stay resident in VMEM across grid steps.
        pl.BlockSpec((Kmax, D, nBD), lambda i: (0, 0, 0)),
        pl.BlockSpec((1, nBD), lambda i: (0, 0)),
        pl.BlockSpec((Kmax, nBD, nBCo), lambda i: (0, 0, 0)),
        pl.BlockSpec((1, nBCo), lambda i: (0, 0)),
        pl.BlockSpec((F, H), lambda i: (0, 0)),
        pl.BlockSpec((1, H), lambda i: (0, 0)),
        pl.BlockSpec((H, C), lambda i: (0, 0)),
        pl.BlockSpec((1, C), lambda i: (0, 0)),
    ]

    out = pl.pallas_call(
        _deep_cnn_kernel,
        out_shape=jax.ShapeDtypeStruct((N_pad, C), jnp.float32),
        grid=(n_steps,),
        in_specs=in_specs,
        out_specs=pl.BlockSpec((NB, C), lambda i: (i, 0)),
        compiler_params=pltpu.CompilerParams(
            dimension_semantics=("parallel",),
            vmem_limit_bytes=vmem_limit,
        ),
    )(emb, w1f, b1c, w2f, b2c,
      params["fc1_w"].astype(jnp.bfloat16), params["fc1_b"],
      params["fc2_w"].astype(jnp.bfloat16), params["fc2_b"])
    return out[:N] if N_pad != N else out


# ---------------------------------------------------------------------------
# Pure-JAX f32 reference (mirrors the PyTorch module) for a correctness check.
# ---------------------------------------------------------------------------
def deep_cnn_reference(x, params):
    emb = params["embed"][x]                        # (N, W, D)
    _, W, _ = emb.shape
    feats = []
    for K, p in zip(params["Ks"], params["branches"]):
        pad = K // 2
        embp = jnp.pad(emb, ((0, 0), (pad, pad), (0, 0)))
        l1 = jax.nn.relu(sum(jnp.einsum("nwd,de->nwe", embp[:, k:k + W, :], p["w1"][k])
                             for k in range(K)) + p["b1"])
        l1p = jnp.pad(l1, ((0, 0), (pad, pad), (0, 0)))
        l2 = jax.nn.relu(sum(jnp.einsum("nwd,dc->nwc", l1p[:, k:k + W, :], p["w2"][k])
                             for k in range(K)) + p["b2"])
        feats.append(jnp.max(l2, axis=1))
    feat = jnp.concatenate(feats, axis=1)
    h1 = jnp.tanh(feat) @ params["fc1_w"] + params["fc1_b"]
    return jnp.tanh(h1) @ params["fc2_w"] + params["fc2_b"]


def init_params(key, *, V, D, C, Co, Ks):
    n_branch = len(Ks)
    keys = jax.random.split(key, 1 + 4 * n_branch + 4)
    it = iter(keys)
    params = {"Ks": tuple(Ks)}
    params["embed"] = jax.random.normal(next(it), (V, D), jnp.float32) * 0.1
    branches = []
    for K in Ks:
        scale = (1.0 / (K * D)) ** 0.5
        branches.append({
            "w1": jax.random.normal(next(it), (K, D, D), jnp.float32) * scale,
            "b1": jax.random.normal(next(it), (1, D), jnp.float32) * 0.01,
            "w2": jax.random.normal(next(it), (K, D, Co), jnp.float32) * scale,
            "b2": jax.random.normal(next(it), (1, Co), jnp.float32) * 0.01,
        })
    params["branches"] = branches
    F = n_branch * Co
    H = F // 2
    params["fc1_w"] = jax.random.normal(next(it), (F, H), jnp.float32) * (1.0 / F) ** 0.5
    params["fc1_b"] = jax.random.normal(next(it), (1, H), jnp.float32) * 0.01
    params["fc2_w"] = jax.random.normal(next(it), (H, C), jnp.float32) * (1.0 / H) ** 0.5
    params["fc2_b"] = jax.random.normal(next(it), (1, C), jnp.float32) * 0.01
    return params


if __name__ == "__main__":
    # Small, module-consistent sizes.
    V, D, C, Co = 20, 32, 4, 8          # embed_num, embed_dim, class_num, kernel_num
    Ks = (3, 5)                          # odd kernel sizes -> padding=K//2 keeps seq len
    N, W = 2, 8                          # batch, sequence length

    key = jax.random.PRNGKey(0)
    pkey, xkey = jax.random.split(key)
    params = init_params(pkey, V=V, D=D, C=C, Co=Co, Ks=Ks)
    x = jax.random.randint(xkey, (N, W), 0, V, dtype=jnp.int32)

    logits = jax.block_until_ready(deep_cnn_forward(x, params))
    assert logits.shape == (N, C), logits.shape

    ref = jax.block_until_ready(deep_cnn_reference(x, params))
    # bf16 MXU inputs (f32 accumulate) vs the f32 reference -> loosened tolerance.
    err = float(jnp.max(jnp.abs(logits - ref)))
    assert jnp.allclose(logits, ref, atol=2e-2, rtol=2e-2), err
    print("KERNEL_OK")
</pallas_src>

<mosaic_0001>
module attributes {stable_mosaic.version = 11 : i64} {
  func.func @_deep_cnn_kernel(%arg0: i32, %arg1: memref<2x8x32xbf16, #tpu.memory_space<vmem>>, %arg2: memref<5x32x64xbf16, #tpu.memory_space<vmem>>, %arg3: memref<1x64xf32, #tpu.memory_space<vmem>>, %arg4: memref<5x64x16xbf16, #tpu.memory_space<vmem>>, %arg5: memref<1x16xf32, #tpu.memory_space<vmem>>, %arg6: memref<16x8xbf16, #tpu.memory_space<vmem>>, %arg7: memref<1x8xf32, #tpu.memory_space<vmem>>, %arg8: memref<8x4xbf16, #tpu.memory_space<vmem>>, %arg9: memref<1x4xf32, #tpu.memory_space<vmem>>, %arg10: memref<2x4xf32, #tpu.memory_space<vmem>>) attributes {dimension_semantics = [#tpu.dimension_semantics<parallel>], iteration_bounds = array<i64: 1>, scalar_prefetch = 0 : i64, scratch_operands = 0 : i64, tpu.core_type = #tpu.core_type<tc>, window_params = [{transform_indices = @transform_0, window_bounds = array<i64: 2, 8, 32>}, {pipeline_mode = #tpu.pipeline_mode<synchronous>, transform_indices = @transform_1, window_bounds = array<i64: 5, 32, 64>}, {pipeline_mode = #tpu.pipeline_mode<synchronous>, transform_indices = @transform_2, window_bounds = array<i64: 1, 64>}, {pipeline_mode = #tpu.pipeline_mode<synchronous>, transform_indices = @transform_3, window_bounds = array<i64: 5, 64, 16>}, {pipeline_mode = #tpu.pipeline_mode<synchronous>, transform_indices = @transform_4, window_bounds = array<i64: 1, 16>}, {pipeline_mode = #tpu.pipeline_mode<synchronous>, transform_indices = @transform_5, window_bounds = array<i64: 16, 8>}, {pipeline_mode = #tpu.pipeline_mode<synchronous>, transform_indices = @transform_6, window_bounds = array<i64: 1, 8>}, {pipeline_mode = #tpu.pipeline_mode<synchronous>, transform_indices = @transform_7, window_bounds = array<i64: 8, 4>}, {pipeline_mode = #tpu.pipeline_mode<synchronous>, transform_indices = @transform_8, window_bounds = array<i64: 1, 4>}, {transform_indices = @transform_9, window_bounds = array<i64: 2, 4>}]} {
    %c0 = arith.constant 0 : index
    %c0_0 = arith.constant 0 : index
    %c0_1 = arith.constant 0 : index
    %0 = vector.load %arg1[%c0, %c0_0, %c0_1] : memref<2x8x32xbf16, #tpu.memory_space<vmem>>, vector<2x8x32xbf16>
    %cst = arith.constant 0.000000e+00 : bf16
    %1 = vector.broadcast %cst : bf16 to vector<2x2x32xbf16>
    %2 = tpu.concatenate %1, %0, %1 in 1 : vector<2x2x32xbf16>, vector<2x8x32xbf16>, vector<2x2x32xbf16> -> vector<2x12x32xbf16>
    %cst_2 = arith.constant 0.000000e+00 : f32
    %3 = vector.broadcast %cst_2 : f32 to vector<16x64xf32>
    %4 = vector.extract_strided_slice %2 {offsets = [0, 0, 0], sizes = [2, 8, 32], strides = [1, 1, 1]} : vector<2x12x32xbf16> to vector<2x8x32xbf16>
    %5 = vector.shape_cast %4 : vector<2x8x32xbf16> to vector<16x32xbf16>
    %c0_3 = arith.constant 0 : index
    %c0_4 = arith.constant 0 : index
    %c0_5 = arith.constant 0 : index
    %6 = vector.load %arg2[%c0_3, %c0_4, %c0_5] : memref<5x32x64xbf16, #tpu.memory_space<vmem>>, vector<1x32x64xbf16>
    %7 = vector.shape_cast %6 : vector<1x32x64xbf16> to vector<32x64xbf16>
    %cst_6 = arith.constant dense<0.000000e+00> : vector<16x64xf32>
    %8 = tpu.matmul %5, %7, %cst_6 {dimension_numbers = #tpu.dot_dimension_numbers<[1], [0], [0], [1], [0, 0, 1, 1], [], []>} : vector<16x32xbf16>, vector<32x64xbf16>, vector<16x64xf32> -> vector<16x64xf32>
    %9 = arith.addf %3, %8 : vector<16x64xf32>
    %10 = vector.extract_strided_slice %2 {offsets = [0, 1, 0], sizes = [2, 8, 32], strides = [1, 1, 1]} : vector<2x12x32xbf16> to vector<2x8x32xbf16>
    %11 = vector.shape_cast %10 : vector<2x8x32xbf16> to vector<16x32xbf16>
    %c1 = arith.constant 1 : index
    %c0_7 = arith.constant 0 : index
    %c0_8 = arith.constant 0 : index
    %12 = vector.load %arg2[%c1, %c0_7, %c0_8] : memref<5x32x64xbf16, #tpu.memory_space<vmem>>, vector<1x32x64xbf16>
    %13 = vector.shape_cast %12 : vector<1x32x64xbf16> to vector<32x64xbf16>
    %cst_9 = arith.constant dense<0.000000e+00> : vector<16x64xf32>
    %14 = tpu.matmul %11, %13, %cst_9 {dimension_numbers = #tpu.dot_dimension_numbers<[1], [0], [0], [1], [0, 0, 1, 1], [], []>} : vector<16x32xbf16>, vector<32x64xbf16>, vector<16x64xf32> -> vector<16x64xf32>
    %15 = arith.addf %9, %14 : vector<16x64xf32>
    %16 = vector.extract_strided_slice %2 {offsets = [0, 2, 0], sizes = [2, 8, 32], strides = [1, 1, 1]} : vector<2x12x32xbf16> to vector<2x8x32xbf16>
    %17 = vector.shape_cast %16 : vector<2x8x32xbf16> to vector<16x32xbf16>
    %c2 = arith.constant 2 : index
    %c0_10 = arith.constant 0 : index
    %c0_11 = arith.constant 0 : index
    %18 = vector.load %arg2[%c2, %c0_10, %c0_11] : memref<5x32x64xbf16, #tpu.memory_space<vmem>>, vector<1x32x64xbf16>
    %19 = vector.shape_cast %18 : vector<1x32x64xbf16> to vector<32x64xbf16>
    %cst_12 = arith.constant dense<0.000000e+00> : vector<16x64xf32>
    %20 = tpu.matmul %17, %19, %cst_12 {dimension_numbers = #tpu.dot_dimension_numbers<[1], [0], [0], [1], [0, 0, 1, 1], [], []>} : vector<16x32xbf16>, vector<32x64xbf16>, vector<16x64xf32> -> vector<16x64xf32>
    %21 = arith.addf %15, %20 : vector<16x64xf32>
    %22 = vector.extract_strided_slice %2 {offsets = [0, 3, 0], sizes = [2, 8, 32], strides = [1, 1, 1]} : vector<2x12x32xbf16> to vector<2x8x32xbf16>
    %23 = vector.shape_cast %22 : vector<2x8x32xbf16> to vector<16x32xbf16>
    %c3 = arith.constant 3 : index
    %c0_13 = arith.constant 0 : index
    %c0_14 = arith.constant 0 : index
    %24 = vector.load %arg2[%c3, %c0_13, %c0_14] : memref<5x32x64xbf16, #tpu.memory_space<vmem>>, vector<1x32x64xbf16>
    %25 = vector.shape_cast %24 : vector<1x32x64xbf16> to vector<32x64xbf16>
    %cst_15 = arith.constant dense<0.000000e+00> : vector<16x64xf32>
    %26 = tpu.matmul %23, %25, %cst_15 {dimension_numbers = #tpu.dot_dimension_numbers<[1], [0], [0], [1], [0, 0, 1, 1], [], []>} : vector<16x32xbf16>, vector<32x64xbf16>, vector<16x64xf32> -> vector<16x64xf32>
    %27 = arith.addf %21, %26 : vector<16x64xf32>
    %28 = vector.extract_strided_slice %2 {offsets = [0, 4, 0], sizes = [2, 8, 32], strides = [1, 1, 1]} : vector<2x12x32xbf16> to vector<2x8x32xbf16>
    %29 = vector.shape_cast %28 : vector<2x8x32xbf16> to vector<16x32xbf16>
    %c4 = arith.constant 4 : index
    %c0_16 = arith.constant 0 : index
    %c0_17 = arith.constant 0 : index
    %30 = vector.load %arg2[%c4, %c0_16, %c0_17] : memref<5x32x64xbf16, #tpu.memory_space<vmem>>, vector<1x32x64xbf16>
    %31 = vector.shape_cast %30 : vector<1x32x64xbf16> to vector<32x64xbf16>
    %cst_18 = arith.constant dense<0.000000e+00> : vector<16x64xf32>
    %32 = tpu.matmul %29, %31, %cst_18 {dimension_numbers = #tpu.dot_dimension_numbers<[1], [0], [0], [1], [0, 0, 1, 1], [], []>} : vector<16x32xbf16>, vector<32x64xbf16>, vector<16x64xf32> -> vector<16x64xf32>
    %33 = arith.addf %27, %32 : vector<16x64xf32>
    %c0_19 = arith.constant 0 : index
    %c0_20 = arith.constant 0 : index
    %34 = vector.load %arg3[%c0_19, %c0_20] : memref<1x64xf32, #tpu.memory_space<vmem>>, vector<1x64xf32>
    %35 = vector.broadcast %34 : vector<1x64xf32> to vector<16x64xf32>
    %36 = arith.addf %33, %35 : vector<16x64xf32>
    %cst_21 = arith.constant 0.000000e+00 : f32
    %37 = vector.broadcast %cst_21 : f32 to vector<16x64xf32>
    %38 = arith.maximumf %36, %37 : vector<16x64xf32>
    %39 = arith.truncf %38 : vector<16x64xf32> to vector<16x64xbf16>
    %40 = vector.shape_cast %39 : vector<16x64xbf16> to vector<2x8x64xbf16>
    %cst_22 = arith.constant 0.000000e+00 : bf16
    %41 = vector.broadcast %cst_22 : bf16 to vector<2x2x64xbf16>
    %42 = tpu.concatenate %41, %40, %41 in 1 : vector<2x2x64xbf16>, vector<2x8x64xbf16>, vector<2x2x64xbf16> -> vector<2x12x64xbf16>
    %cst_23 = arith.constant 0.000000e+00 : f32
    %43 = vector.broadcast %cst_23 : f32 to vector<16x16xf32>
    %44 = vector.extract_strided_slice %42 {offsets = [0, 0, 0], sizes = [2, 8, 64], strides = [1, 1, 1]} : vector<2x12x64xbf16> to vector<2x8x64xbf16>
    %45 = vector.shape_cast %44 : vector<2x8x64xbf16> to vector<16x64xbf16>
    %c0_24 = arith.constant 0 : index
    %c0_25 = arith.constant 0 : index
    %c0_26 = arith.constant 0 : index
    %46 = vector.load %arg4[%c0_24, %c0_25, %c0_26] : memref<5x64x16xbf16, #tpu.memory_space<vmem>>, vector<1x64x16xbf16>
    %47 = vector.shape_cast %46 : vector<1x64x16xbf16> to vector<64x16xbf16>
    %cst_27 = arith.constant dense<0.000000e+00> : vector<16x16xf32>
    %48 = tpu.matmul %45, %47, %cst_27 {dimension_numbers = #tpu.dot_dimension_numbers<[1], [0], [0], [1], [0, 0, 1, 1], [], []>} : vector<16x64xbf16>, vector<64x16xbf16>, vector<16x16xf32> -> vector<16x16xf32>
    %49 = arith.addf %43, %48 : vector<16x16xf32>
    %50 = vector.extract_strided_slice %42 {offsets = [0, 1, 0], sizes = [2, 8, 64], strides = [1, 1, 1]} : vector<2x12x64xbf16> to vector<2x8x64xbf16>
    %51 = vector.shape_cast %50 : vector<2x8x64xbf16> to vector<16x64xbf16>
    %c1_28 = arith.constant 1 : index
    %c0_29 = arith.constant 0 : index
    %c0_30 = arith.constant 0 : index
    %52 = vector.load %arg4[%c1_28, %c0_29, %c0_30] : memref<5x64x16xbf16, #tpu.memory_space<vmem>>, vector<1x64x16xbf16>
    %53 = vector.shape_cast %52 : vector<1x64x16xbf16> to vector<64x16xbf16>
    %cst_31 = arith.constant dense<0.000000e+00> : vector<16x16xf32>
    %54 = tpu.matmul %51, %53, %cst_31 {dimension_numbers = #tpu.dot_dimension_numbers<[1], [0], [0], [1], [0, 0, 1, 1], [], []>} : vector<16x64xbf16>, vector<64x16xbf16>, vector<16x16xf32> -> vector<16x16xf32>
    %55 = arith.addf %49, %54 : vector<16x16xf32>
    %56 = vector.extract_strided_slice %42 {offsets = [0, 2, 0], sizes = [2, 8, 64], strides = [1, 1, 1]} : vector<2x12x64xbf16> to vector<2x8x64xbf16>
    %57 = vector.shape_cast %56 : vector<2x8x64xbf16> to vector<16x64xbf16>
    %c2_32 = arith.constant 2 : index
    %c0_33 = arith.constant 0 : index
    %c0_34 = arith.constant 0 : index
    %58 = vector.load %arg4[%c2_32, %c0_33, %c0_34] : memref<5x64x16xbf16, #tpu.memory_space<vmem>>, vector<1x64x16xbf16>
    %59 = vector.shape_cast %58 : vector<1x64x16xbf16> to vector<64x16xbf16>
    %cst_35 = arith.constant dense<0.000000e+00> : vector<16x16xf32>
    %60 = tpu.matmul %57, %59, %cst_35 {dimension_numbers = #tpu.dot_dimension_numbers<[1], [0], [0], [1], [0, 0, 1, 1], [], []>} : vector<16x64xbf16>, vector<64x16xbf16>, vector<16x16xf32> -> vector<16x16xf32>
    %61 = arith.addf %55, %60 : vector<16x16xf32>
    %62 = vector.extract_strided_slice %42 {offsets = [0, 3, 0], sizes = [2, 8, 64], strides = [1, 1, 1]} : vector<2x12x64xbf16> to vector<2x8x64xbf16>
    %63 = vector.shape_cast %62 : vector<2x8x64xbf16> to vector<16x64xbf16>
    %c3_36 = arith.constant 3 : index
    %c0_37 = arith.constant 0 : index
    %c0_38 = arith.constant 0 : index
    %64 = vector.load %arg4[%c3_36, %c0_37, %c0_38] : memref<5x64x16xbf16, #tpu.memory_space<vmem>>, vector<1x64x16xbf16>
    %65 = vector.shape_cast %64 : vector<1x64x16xbf16> to vector<64x16xbf16>
    %cst_39 = arith.constant dense<0.000000e+00> : vector<16x16xf32>
    %66 = tpu.matmul %63, %65, %cst_39 {dimension_numbers = #tpu.dot_dimension_numbers<[1], [0], [0], [1], [0, 0, 1, 1], [], []>} : vector<16x64xbf16>, vector<64x16xbf16>, vector<16x16xf32> -> vector<16x16xf32>
    %67 = arith.addf %61, %66 : vector<16x16xf32>
    %68 = vector.extract_strided_slice %42 {offsets = [0, 4, 0], sizes = [2, 8, 64], strides = [1, 1, 1]} : vector<2x12x64xbf16> to vector<2x8x64xbf16>
    %69 = vector.shape_cast %68 : vector<2x8x64xbf16> to vector<16x64xbf16>
    %c4_40 = arith.constant 4 : index
    %c0_41 = arith.constant 0 : index
    %c0_42 = arith.constant 0 : index
    %70 = vector.load %arg4[%c4_40, %c0_41, %c0_42] : memref<5x64x16xbf16, #tpu.memory_space<vmem>>, vector<1x64x16xbf16>
    %71 = vector.shape_cast %70 : vector<1x64x16xbf16> to vector<64x16xbf16>
    %cst_43 = arith.constant dense<0.000000e+00> : vector<16x16xf32>
    %72 = tpu.matmul %69, %71, %cst_43 {dimension_numbers = #tpu.dot_dimension_numbers<[1], [0], [0], [1], [0, 0, 1, 1], [], []>} : vector<16x64xbf16>, vector<64x16xbf16>, vector<16x16xf32> -> vector<16x16xf32>
    %73 = arith.addf %67, %72 : vector<16x16xf32>
    %c0_44 = arith.constant 0 : index
    %c0_45 = arith.constant 0 : index
    %74 = vector.load %arg5[%c0_44, %c0_45] : memref<1x16xf32, #tpu.memory_space<vmem>>, vector<1x16xf32>
    %75 = vector.broadcast %74 : vector<1x16xf32> to vector<16x16xf32>
    %76 = arith.addf %73, %75 : vector<16x16xf32>
    %cst_46 = arith.constant 0.000000e+00 : f32
    %77 = vector.broadcast %cst_46 : f32 to vector<16x16xf32>
    %78 = arith.maximumf %76, %77 : vector<16x16xf32>
    %79 = vector.shape_cast %78 : vector<16x16xf32> to vector<2x8x16xf32>
    %cst_47 = arith.constant dense<0xFF800000> : vector<2x16xf32>
    %80 = vector.multi_reduction <maximumf>, %79, %cst_47 [1] : vector<2x8x16xf32> to vector<2x16xf32>
    %81 = math.tanh %80 : vector<2x16xf32>
    %82 = arith.truncf %81 : vector<2x16xf32> to vector<2x16xbf16>
    %c0_48 = arith.constant 0 : index
    %c0_49 = arith.constant 0 : index
    %83 = vector.load %arg6[%c0_48, %c0_49] : memref<16x8xbf16, #tpu.memory_space<vmem>>, vector<16x8xbf16>
    %cst_50 = arith.constant dense<0.000000e+00> : vector<2x8xf32>
    %84 = tpu.matmul %82, %83, %cst_50 {dimension_numbers = #tpu.dot_dimension_numbers<[1], [0], [0], [1], [0, 0, 1, 1], [], []>} : vector<2x16xbf16>, vector<16x8xbf16>, vector<2x8xf32> -> vector<2x8xf32>
    %c0_51 = arith.constant 0 : index
    %c0_52 = arith.constant 0 : index
    %85 = vector.load %arg7[%c0_51, %c0_52] : memref<1x8xf32, #tpu.memory_space<vmem>>, vector<1x8xf32>
    %86 = vector.broadcast %85 : vector<1x8xf32> to vector<2x8xf32>
    %87 = arith.addf %84, %86 : vector<2x8xf32>
    %88 = math.tanh %87 : vector<2x8xf32>
    %89 = arith.truncf %88 : vector<2x8xf32> to vector<2x8xbf16>
    %c0_53 = arith.constant 0 : index
    %c0_54 = arith.constant 0 : index
    %90 = vector.load %arg8[%c0_53, %c0_54] : memref<8x4xbf16, #tpu.memory_space<vmem>>, vector<8x4xbf16>
    %cst_55 = arith.constant dense<0.000000e+00> : vector<2x4xf32>
    %91 = tpu.matmul %89, %90, %cst_55 {dimension_numbers = #tpu.dot_dimension_numbers<[1], [0], [0], [1], [0, 0, 1, 1], [], []>} : vector<2x8xbf16>, vector<8x4xbf16>, vector<2x4xf32> -> vector<2x4xf32>
    %c0_56 = arith.constant 0 : index
    %c0_57 = arith.constant 0 : index
    %92 = vector.load %arg9[%c0_56, %c0_57] : memref<1x4xf32, #tpu.memory_space<vmem>>, vector<1x4xf32>
    %93 = vector.broadcast %92 : vector<1x4xf32> to vector<2x4xf32>
    %94 = arith.addf %91, %93 : vector<2x4xf32>
    %c0_58 = arith.constant 0 : index
    %c0_59 = arith.constant 0 : index
    %95 = vector.load %arg10[%c0_58, %c0_59] : memref<2x4xf32, #tpu.memory_space<vmem>>, vector<2x4xf32>
    tpu.vector_store %arg10[%c0_58, %c0_59], %94 {strides = array<i32>} : memref<2x4xf32, #tpu.memory_space<vmem>>, vector<2x4xf32>,
    return
  }
  func.func @transform_0(%arg0: i32) -> (i32, i32, i32) {
    %c0_i32 = arith.constant 0 : i32
    %c0_i32_0 = arith.constant 0 : i32
    %c0_i32_1 = arith.constant 0 : i32
    return %arg0, %c0_i32, %c0_i32_0 : i32, i32, i32
  }
  func.func @transform_1(%arg0: i32) -> (i32, i32, i32) {
    %c0_i32 = arith.constant 0 : i32
    %c0_i32_0 = arith.constant 0 : i32
    %c0_i32_1 = arith.constant 0 : i32
    %c0_i32_2 = arith.constant 0 : i32
    return %c0_i32, %c0_i32_0, %c0_i32_1 : i32, i32, i32
  }
  func.func @transform_2(%arg0: i32) -> (i32, i32) {
    %c0_i32 = arith.constant 0 : i32
    %c0_i32_0 = arith.constant 0 : i32
    %c0_i32_1 = arith.constant 0 : i32
    return %c0_i32, %c0_i32_0 : i32, i32
  }
  func.func @transform_3(%arg0: i32) -> (i32, i32, i32) {
    %c0_i32 = arith.constant 0 : i32
    %c0_i32_0 = arith.constant 0 : i32
    %c0_i32_1 = arith.constant 0 : i32
    %c0_i32_2 = arith.constant 0 : i32
    return %c0_i32, %c0_i32_0, %c0_i32_1 : i32, i32, i32
  }
  func.func @transform_4(%arg0: i32) -> (i32, i32) {
    %c0_i32 = arith.constant 0 : i32
    %c0_i32_0 = arith.constant 0 : i32
    %c0_i32_1 = arith.constant 0 : i32
    return %c0_i32, %c0_i32_0 : i32, i32
  }
  func.func @transform_5(%arg0: i32) -> (i32, i32) {
    %c0_i32 = arith.constant 0 : i32
    %c0_i32_0 = arith.constant 0 : i32
    %c0_i32_1 = arith.constant 0 : i32
    return %c0_i32, %c0_i32_0 : i32, i32
  }
  func.func @transform_6(%arg0: i32) -> (i32, i32) {
    %c0_i32 = arith.constant 0 : i32
    %c0_i32_0 = arith.constant 0 : i32
    %c0_i32_1 = arith.constant 0 : i32
    return %c0_i32, %c0_i32_0 : i32, i32
  }
  func.func @transform_7(%arg0: i32) -> (i32, i32) {
    %c0_i32 = arith.constant 0 : i32
    %c0_i32_0 = arith.constant 0 : i32
    %c0_i32_1 = arith.constant 0 : i32
    return %c0_i32, %c0_i32_0 : i32, i32
  }
  func.func @transform_8(%arg0: i32) -> (i32, i32) {
    %c0_i32 = arith.constant 0 : i32
    %c0_i32_0 = arith.constant 0 : i32
    %c0_i32_1 = arith.constant 0 : i32
    return %c0_i32, %c0_i32_0 : i32, i32
  }
  func.func @transform_9(%arg0: i32) -> (i32, i32) {
    %c0_i32 = arith.constant 0 : i32
    %c0_i32_0 = arith.constant 0 : i32
    return %arg0, %c0_i32 : i32, i32
  }
}

</mosaic_0001>

<bundles_post_ra>
// kernel: tpu_custom_call.1
= control target key start
LH: loop header
LB: loop body
LE: loop exit
PB: predicated region body
PF: predicated region fallthrough
CT: control target
= control target key end

     0   :  { %v1484_v1 = vmov 0.0   ;;  %vm1485_vm0 = vmmov 0   ;;  %vm44_vm1 = vcmask 1040384   ;;  %vm50_vm2 = vcmask 1044480   ;;  %s1825_s0 = inlined_call_operand.vmem [shape: bf16[2,8,32], index: 0, kind: input, shape index: {}]   ;;  %s1826_s1 = inlined_call_operand.vmem [shape: bf16[5,32,64], index: 1, kind: input, shape index: {}]   ;;  %s1827_s2 = inlined_call_operand.vmem [shape: f32[1,64], index: 2, kind: input, shape index: {}]   ;;  %s1828_s3 = inlined_call_operand.vmem [shape: bf16[5,64,16], index: 3, kind: input, shape index: {}]   ;;  %s1829_s4 = inlined_call_operand.vmem [shape: f32[1,16], index: 4, kind: input, shape index: {}]   ;;  %s1830_s5 = inlined_call_operand.vmem [shape: bf16[16,8], index: 5, kind: input, shape index: {}]   ;;  %s1831_s6 = inlined_call_operand.vmem [shape: f32[1,8], index: 6, kind: input, shape index: {}]   ;;  %s1832_s7 = inlined_call_operand.vmem [shape: bf16[8,4], index: 7, kind: input, shape index: {}]   ;;  %s1833_s8 = inlined_call_operand.vmem [shape: f32[1,4], index: 8, kind: input, shape index: {}]   ;;  %s1834_s9 = inlined_call_operand.hbm [shape: f32[2,4], index: 9, kind: output, shape index: {}]  }
   0x1   :  { %v1421_v0 = vld [vmem:[%s1826_s1 + $0x10] sm:$0xff]   ;;  %1306 = vmatprep.subr.bf16.mxu0 %v1484_v1  ;;  %1314 = vmatprep.subr.bf16.mxu1 %v1484_v1  ;;  %v1422_v2 = vld [vmem:[%s1826_s1] sm:$0xff]   ;;  %v1423_v3 = vld [vmem:[%s1826_s1 + $0x18] sm:$0xff]   ;;  %vm67_vm3 = vsmask.f32 3328  ;;  %vm118_vm5 = vcmask 261120  }
   0x2   :  { %1307 = vmatpush3.bf16.msra.mxu0 %v1421_v0  ;;  %1310 = vmatprep.mubr.msk.bf16.mxu0 %vm1485_vm0, %v1484_v1  ;;  %v1424_v4 = vld [vmem:[%s1826_s1 + $0x8] sm:$0xff]   ;;  %v1425_v5 = vld [vmem:[%s1825_s0] ss:$0 sps:$4 sm:$0xff]   ;;  %v1426_v6 = vld [vmem:[%s1825_s0 + $0x4] ss:$0 sps:$4 sm:$0xff]   ;;  %vm220_vm6 = vcmask 1042432  }
   0x3   :  { %1315 = vmatpush3.bf16.msra.mxu1 %v1422_v2  ;;  %1308 = vmatprep.subr.bf16.mxu0 %v1484_v1  ;;  %v42_v7 = vrot.slane %v1425_v5, 7  ;;  %vm68_vm4 = vsmask.f32 7440  ;;  %v43_v8 = vrot.slane %v1426_v6, 7  ;;  %v1428_v12 = vld [vmem:[%s1826_s1 + $0x30] sm:$0xff]   ;;  %vm221_vm7 = vcmask 1046532  }
   0x4   :  { %1316 = vmatprep.subr.bf16.mxu1 %v1484_v1  ;;  %1318 = vmatprep.mubr.msk.bf16.mxu1 %vm1485_vm0, %v1484_v1  ;;  %v1430_v26 = vld [vmem:[%s1826_s1 + $0x38] sm:$0xff]   ;;  %vm1597_vm8 = vmor %vm67_vm3, %vm68_vm4  ;;  %vm297_vm9 = vsmask.f32 2304  ;;  %vm298_vm10 = vsmask.f32 6416  ;;  %v1427_v47 = vld [vmem:[%s1826_s1 + $0x20] sm:$0xff]  }
   0x5   :  { %v47_v9 = vsel %vm44_vm1, 0, %v42_v7  ;;  %v49_v10 = vsel %vm44_vm1, 0, %v43_v8  ;;  %vm386_vm11 = vcmask 1041408   ;;  %vm1615_vm12 = vmor %vm220_vm6, %vm221_vm7  ;;  %vm387_vm14 = vcmask 1045508   ;;  %v1429_v61 = vld [vmem:[%s1826_s1 + $0x28] sm:$0xff]  }
   0x6   :  { %1309 = vmatpush3.bf16.msra.mxu0 %v1423_v3  ;;  %v51_v11 = vsel %vm50_vm2, %v47_v9, 0  ;;  %v52_v13 = vsel %vm50_vm2, %v49_v10, 0  ;;  %vm1621_vm13 = vmor %vm297_vm9, %vm298_vm10  ;;  %v1431_v10 = vld [vmem:[%s1826_s1 + $0x40] sm:$0xff]  }
   0x7   :  { %1317 = vmatpush3.bf16.msra.mxu1 %v1424_v4  ;;  %1322 = vmatprep.subr.bf16.mxu0 %v1484_v1  ;;  %v1572_v14 = vcombine.low %v51_v11, %v51_v11  ;;  %v1574_v15 = vcombine.high %v51_v11, %v51_v11  ;;  %v1576_v16 = vcombine.low %v52_v13, %v52_v13  ;;  %vm1632_vm15 = vmor %vm386_vm11, %vm387_vm14 }
   0x8   :  { %1330 = vmatprep.subr.bf16.mxu1 %v1484_v1  ;;  %v1578_v17 = vcombine.high %v52_v13, %v52_v13  ;;  %v1149_v18 = vcombine.low %v51_v11, %v52_v13  ;;  %v1432_v13 = vld [vmem:[%s1826_s1 + $0x48] sm:$0xff]  }
   0x9   :  { %v71_v19 = vshrl.u32 %v1572_v14, 16  ;;  %v74_v20 = vshll.u32 %v1572_v14, 16  ;;  %v80_v21 = vshll.u32 %v1574_v15, 16  ;;  %v1153_v22 = vrot.slane %v1572_v14, 9 }
   0xa   :  { %v85_v23 = vshrl.u32 %v1576_v16, 16  ;;  %v88_v24 = vshll.u32 %v1576_v16, 16  ;;  %v94_v25 = vshll.u32 %v1578_v17, 16  ;;  %1319 = vmatmul.mubr.msk.bf16.vlgmr.msra.gmra.mrb[0].mxu1 %vm118_vm5, %v1149_v18  ;;  %v225_v27 = vrot.slane %v1574_v15, 5 }
   0xb   :  { %v73_v28 = vrot.slane %v71_v19, 4  ;;  %v76_v29 = vrot.slane %v74_v20, 5  ;;  %v82_v30 = vrot.slane %v80_v21, 5  ;;  %v300_v31 = vrot.slane %v71_v19, 5  ;;  %1331 = vmatpush3.bf16.msra.mxu1 %v1428_v12  ;;  %1334 = vmatprep.mubr.msk.bf16.mxu1 %vm1485_vm0, %v1484_v1 }
   0xc   :  { %v87_v32 = vrot.slane %v85_v23, 4  ;;  %v90_v33 = vrot.slane %v88_v24, 5  ;;  %v96_v34 = vrot.slane %v94_v25, 5  ;;  %v301_v35 = vrot.slane %v74_v20, 6  ;;  %1332 = vmatprep.subr.bf16.mxu1 %v1484_v1 }
   0xd   :  { %v77_v36 = vor.u32 %v76_v29, %v73_v28  ;;  %v307_v37 = vrot.slane %v80_v21, 6  ;;  %v310_v38 = vrot.slane %v85_v23, 5  ;;  %v311_v39 = vrot.slane %v88_v24, 6 }
   0xe   :  { %v91_v41 = vor.u32 %v90_v33, %v87_v32  ;;  %v317_v42 = vrot.slane %v94_v25, 6  ;;  %v1154_v43 = vrot.slane %v1576_v16, 9  ;;  %v229_v45 = vrot.slane %v1578_v17, 5 }
   0xf   :  { %v78_v44 = vrot.slane %v77_v36, 4  ;;  %1333 = vmatpush3.bf16.msra.mxu1 %v1430_v26  ;;  %v302_v48 = vor.u32 %v301_v35, %v300_v31  ;;  %v304_v49 = vshrl.u32 %v1574_v15, 16  ;;  %v312_v50 = vor.u32 %v311_v39, %v310_v38 }
  0x10   :  { %v92_v46 = vrot.slane %v91_v41, 4  ;;  %1346 = vmatprep.subr.bf16.mxu1 %v1484_v1  ;;  %v314_v52 = vshrl.u32 %v1578_v17, 16  ;;  %v1171_v63 = vrot.slane %v1572_v14, 10  ;;  %v391_v0 = vrot.slane %v1574_v15, 6 }
  0x11   :  { %v83_v51 = vsel %vm1597_vm8, %v78_v44, %v82_v30  ;;  %v303_v55 = vrot.slane %v302_v48, 4  ;;  %v306_v56 = vrot.slane %v304_v49, 5  ;;  %v313_v59 = vrot.slane %v312_v50, 4 }
  0x12   :  { %v97_v53 = vsel %vm1597_vm8, %v92_v46, %v96_v34  ;;  %v316_v60 = vrot.slane %v314_v52, 5  ;;  %v1172_v4 = vrot.slane %v1576_v16, 10  ;;  %v395_v5 = vrot.slane %v1578_v17, 6 }
  0x13   :  { %v1145_v57 = vcombine.low %v83_v51, %v97_v53  ;;  %v308_v62 = vor.u32 %v307_v37, %v306_v56  ;;  %v226_v6 = vsel %vm1615_vm12, %v1153_v22, %v225_v27  ;;  %v230_v7 = vsel %vm1615_vm12, %v1154_v43, %v229_v45 }
  0x14   :  { %v318_v2 = vor.u32 %v317_v42, %v316_v60  ;;  %v1159_v12 = vcombine.low %v226_v6, %v230_v7  ;;  %v392_v14 = vsel %vm1632_vm15, %v1171_v63, %v391_v0  ;;  %v396_v15 = vsel %vm1632_vm15, %v1172_v4, %v395_v5 }
  0x15   :  { %1311 = vmatmul.mubr.msk.bf16.vlgmr.msra.gmra.mrb[0].mxu0 %vm118_vm5, %v1145_v57  ;;  %v309_v8 = vsel %vm1621_vm13, %v303_v55, %v308_v62 }
  0x16   :  { %1323 = vmatpush3.bf16.msra.mxu0 %v1427_v47  ;;  %1326 = vmatprep.mubr.msk.bf16.mxu0 %vm1485_vm0, %v1484_v1  ;;  %v319_v9 = vsel %vm1621_vm13, %v313_v59, %v318_v2 }
  0x17   :  { %1324 = vmatprep.subr.bf16.mxu0 %v1484_v1  ;;  %v1167_v11 = vcombine.low %v309_v8, %v319_v9 }
  0x19   :  { %1335 = vmatmul.mubr.msk.bf16.vlgmr.msra.gmra.mrb[4].mxu1 %vm118_vm5, %v1167_v11 }
  0x1a   :  { %1325 = vmatpush3.bf16.msra.mxu0 %v1429_v61  ;;  %1354 = vmatprep.mubr.msk.bf16.mxu1 %vm1485_vm0, %v1484_v1 }
  0x1b   :  { %1338 = vmatprep.subr.bf16.mxu0 %v1484_v1 }
  0x1d   :  { %1327 = vmatmul.mubr.msk.bf16.vlgmr.msra.gmra.mrb[4].mxu0 %vm118_vm5, %v1159_v12 }
  0x1e   :  { %1339 = vmatpush3.bf16.msra.mxu0 %v1431_v10  ;;  %1342 = vmatprep.mubr.msk.bf16.mxu0 %vm1485_vm0, %v1484_v1 }
  0x1f   :  { %1340 = vmatprep.subr.bf16.mxu0 %v1484_v1 }
  0x20   :  { %14 = vsyncpa [#allocation3], 0  ;;  %v1177_v16 = vcombine.low %v392_v14, %v396_v15  ;;  %v1433_v17 = vld [vmem:[%s1828_s3] sm:$0xff]   ;;  %v1434_v18 = vld [vmem:[%s1828_s3 + $0x8] sm:$0xff]   ;;  %vm570_vm3 = vcmask 523264   ;;  %vm1075_vm4 = vcmask 1043456  }
  0x21   :  { %v1435_v19 = vld [vmem:[%s1828_s3 + $0x10] sm:$0xff]   ;;  %v1436_v20 = vld [vmem:[%s1828_s3 + $0x20] sm:$0xff]   ;;  %v1437_v21 = vld [vmem:[%s1828_s3 + $0x18] sm:$0xff]  }
  0x22   :  { %1341 = vmatpush3.bf16.msra.mxu0 %v1432_v13  ;;  %1347 = vmatpush3.bf16.msra.mxu1 %v1436_v20  ;;  %v1438_v22 = vld [vmem:[%s1828_s3 + $0x28] sm:$0xff]   ;;  %v1440_v23 = vld [vmem:[%s1828_s3 + $0x30] sm:$0xff]   ;;  %v1442_v24 = vld [vmem:[%s1828_s3 + $0x38] sm:$0xff]  }
  0x23   :  { %1358 = vmatprep.subr.bf16.mxu0 %v1484_v1  ;;  %1348 = vmatprep.subr.bf16.mxu1 %v1484_v1  ;;  %v1181_v49 = vld [vmem:[%s1827_s2] ss:$0 sm:$0xff]  ;;  %v1445_v3 = vld [vmem:[%s1828_s3 + $0x78] sm:$0xff]   ;;  %v1446_v40 = vld [vmem:[%s1828_s3 + $0x48] sm:$0xff]  }
  0x24   :  { %v1447_v58 = vld [vmem:[%s1828_s3 + $0x50] sm:$0xff]  }
  0x25   :  { %1343 = vmatmul.mubr.msk.bf16.vlgmr.msra.gmra.mrb[8].mxu0 %vm118_vm5, %v1177_v16  ;;  %vm1071_vm5 = vcmask 64512  }
  0x26   :  { %1366 = vmatprep.mubr.msk.bf16.mxu0 %vm1485_vm0, %v1484_v1  ;;  %1359 = vmatpush3.bf16.msra.mxu0 %v1433_v17 }
  0x27   :  { %1360 = vmatprep.subr.bf16.mxu0 %v1484_v1  ;;  %1349 = vmatpush3.bf16.msra.mxu1 %v1438_v22 }
  0x28   :  { %1350 = vmatprep.subr.bf16.mxu1 %v1484_v1 }
  0x2a   :  { %1361 = vmatpush3.bf16.msra.mxu0 %v1434_v18 }
  0x2b   :  { %1362 = vmatprep.subr.bf16.mxu0 %v1484_v1  ;;  %1351 = vmatpush3.bf16.msra.mxu1 %v1440_v23  ;;  %v1439_v23 = vld [vmem:[%s1828_s3 + $0x60] sm:$0xff]  }
  0x2c   :  { %1352 = vmatprep.subr.bf16.mxu1 %v1484_v1 }
  0x2e   :  { %1363 = vmatpush3.bf16.msra.mxu0 %v1435_v19 }
  0x2f   :  { %1364 = vmatprep.subr.bf16.mxu0 %v1484_v1  ;;  %1353 = vmatpush3.bf16.msra.mxu1 %v1442_v24 }
  0x30   :  { %1370 = vmatprep.subr.bf16.mxu1 %v1484_v1 }
  0x32   :  { %1365 = vmatpush3.bf16.msra.mxu0 %v1437_v21 }
  0x33   :  { %1382 = vmatprep.subr.bf16.mxu0 %v1484_v1 }
  0xdd   :  { %v213_v25 = vpop.f32.mrb[0].mxu1 }
  0xde   :  { %v1320_v26 = vpop.f32.mrb[1].mxu1 }
  0xdf   :  { %v216_v27 = vpop.f32.mrb[2].mxu1 }
  0xe0   :  { %v1321_v28 = vpop.f32.mrb[3].mxu1 }
  0xe8   :  { %v156_v29 = vpop.f32.mrb[0].mxu0 }
  0xe9   :  { %v214_v30 = vadd.f32 %v213_v25, %v156_v29  ;;  %v1312_v31 = vpop.f32.mrb[1].mxu0 }
  0xea   :  { %v159_v32 = vpop.f32.mrb[2].mxu0 }
  0xeb   :  { %v217_v33 = vadd.f32 %v216_v27, %v159_v32  ;;  %v1313_v34 = vpop.f32.mrb[3].mxu0 }
  0xec   :  { %v377_v35 = vpop.f32.mrb[4].mxu1 }
  0xed   :  { %v1336_v36 = vpop.f32.mrb[5].mxu1 }
  0xee   :  { %v380_v37 = vpop.f32.mrb[6].mxu1 }
  0xef   :  { %v1337_v39 = vpop.f32.mrb[7].mxu1 }
  0xf0   :  { %v288_v38 = vpop.f32.mrb[4].mxu0 }
  0xf1   :  { %v295_v41 = vadd.f32 %v288_v38, %v214_v30  ;;  %v1328_v42 = vpop.f32.mrb[5].mxu0 }
  0xf2   :  { %v291_v43 = vpop.f32.mrb[6].mxu0 }
  0xf3   :  { %v296_v44 = vadd.f32 %v291_v43, %v217_v33  ;;  %v384_v45 = vadd.f32 %v377_v35, %v295_v41  ;;  %v1329_v46 = vpop.f32.mrb[7].mxu0  ;;  %v1441_v41 = vld [vmem:[%s1828_s3 + $0x68] sm:$0xff]  }
  0xf5   :  { %v385_v47 = vadd.f32 %v380_v37, %v296_v44 }
  0xf8   :  { %v454_v48 = vpop.f32.mrb[8].mxu0 }
  0xf9   :  { %v461_v50 = vadd.f32 %v454_v48, %v384_v45  ;;  %v1344_v51 = vpop.f32.mrb[9].mxu0 }
  0xfa   :  { %v457_v52 = vpop.f32.mrb[10].mxu0 }
  0xfb   :  { %v470_v53 = vadd.f32 %v1181_v49, %v461_v50  ;;  %v462_v55 = vadd.f32 %v457_v52, %v385_v47  ;;  %v1345_v56 = vpop.f32.mrb[11].mxu0 }
  0xfd   :  { %v472_v57 = vmax.f32 %v470_v53, 0.0  ;;  %v471_v59 = vadd.f32 %v1181_v49, %v462_v55  ;;  %v1443_v55 = vld [vmem:[%s1828_s3 + $0x70] sm:$0xff]  }
  0xff   :  { %v1260_v60 = vpack.c.bf16 %v472_v57, %v472_v57  ;;  %v473_v61 = vmax.f32 %v471_v59, 0.0 }
 0x101   :  { %v480_v62 = vrot.slane %v1260_v60, 7  ;;  %v1261_v63 = vpack.c.bf16 %v473_v61, %v473_v61 }
 0x103   :  { %v483_v0 = vsel %vm44_vm1, 0, %v480_v62  ;;  %v481_v2 = vrot.slane %v1261_v63, 7 }
 0x104   :  { %v486_v4 = vsel %vm50_vm2, %v483_v0, 0  ;;  %v1444_v0 = vld [vmem:[%s1828_s3 + $0x40] sm:$0xff]  }
 0x105   :  { %v1708_v5 = vcombine.low %v486_v4, %v486_v4  ;;  %v1185_v6 = vcombine.high %v486_v4, %v486_v4  ;;  %v485_v7 = vsel %vm44_vm1, 0, %v481_v2  ;;  %vm977_vm1 = vcmask 130048  }
 0x106   :  { %v487_v11 = vsel %vm50_vm2, %v485_v7, 0  ;;  %vm1009_vm2 = vcmask 1041409  }
 0x107   :  { %v507_v8 = vshrl.u32 %v1708_v5, 16  ;;  %v510_v9 = vshll.u32 %v1708_v5, 16  ;;  %v516_v10 = vshll.u32 %v1185_v6, 16  ;;  %v1208_v12 = vrot.slane %v1708_v5, 9 }
 0x108   :  { %v686_v13 = vrot.slane %v1185_v6, 5  ;;  %v778_v14 = vshrl.u32 %v1185_v6, 16  ;;  %v1238_v19 = vrot.slane %v1708_v5, 10  ;;  %v878_v20 = vrot.slane %v1185_v6, 6 }
 0x109   :  { %v509_v15 = vrot.slane %v507_v8, 4  ;;  %v512_v16 = vrot.slane %v510_v9, 5  ;;  %v774_v17 = vrot.slane %v507_v8, 5  ;;  %v775_v18 = vrot.slane %v510_v9, 6  ;;  %v1448_v8 = vld [vmem:[%s1828_s3 + $0x58] sm:$0xff]   ;;  %v1449_v9 = vld [vmem:[%s1828_s3 + $0x80] sm:$0xff]  }
 0x10a   :  { %v1186_v21 = vcombine.low %v487_v11, %v487_v11  ;;  %v1187_v22 = vcombine.high %v487_v11, %v487_v11  ;;  %v780_v24 = vrot.slane %v778_v14, 5  ;;  %v781_v25 = vrot.slane %v516_v10, 6 }
 0x10b   :  { %v1202_v26 = vcombine.low %v486_v4, %v487_v11  ;;  %v513_v27 = vor.u32 %v512_v16, %v509_v15  ;;  %v776_v31 = vor.u32 %v775_v18, %v774_v17  ;;  %v518_v46 = vrot.slane %v516_v10, 5  ;;  %v1450_v10 = vld [vmem:[%s1828_s3 + $0x88] sm:$0xff]   ;;  %v1451_v11 = vld [vmem:[%s1828_s3 + $0x90] sm:$0xff]  }
 0x10c   :  { %v521_v28 = vshrl.u32 %v1186_v21, 16  ;;  %v524_v29 = vshll.u32 %v1186_v21, 16  ;;  %v530_v30 = vshll.u32 %v1187_v22, 16  ;;  %v1209_v32 = vrot.slane %v1186_v21, 9 }
 0x10d   :  { %v690_v33 = vrot.slane %v1187_v22, 5  ;;  %v788_v34 = vshrl.u32 %v1187_v22, 16  ;;  %v1239_v35 = vrot.slane %v1186_v21, 10  ;;  %1367 = vmatmul.mubr.msk.bf16.vlgmr.msra.gmra.mrb[12].mxu0 %vm570_vm3, %v1202_v26  ;;  %v882_v44 = vrot.slane %v1187_v22, 6 }
 0x10e   :  { %v523_v36 = vrot.slane %v521_v28, 4  ;;  %v526_v37 = vrot.slane %v524_v29, 5  ;;  %v784_v38 = vrot.slane %v521_v28, 5  ;;  %v785_v39 = vrot.slane %v524_v29, 6  ;;  %1383 = vmatpush3.bf16.msra.mxu0 %v1439_v23  ;;  %1390 = vmatprep.mubr.msk.bf16.mxu0 %vm1485_vm0, %v1484_v1 }
 0x10f   :  { %v790_v42 = vrot.slane %v788_v34, 5  ;;  %v791_v43 = vrot.slane %v530_v30, 6  ;;  %1384 = vmatprep.subr.bf16.mxu0 %v1484_v1  ;;  %v514_v45 = vrot.slane %v513_v27, 4  ;;  %v777_v48 = vrot.slane %v776_v31, 4 }
 0x110   :  { %v527_v47 = vor.u32 %v526_v37, %v523_v36  ;;  %v786_v49 = vor.u32 %v785_v39, %v784_v38  ;;  %v532_v50 = vrot.slane %v530_v30, 5  ;;  %v782_v51 = vor.u32 %v781_v25, %v780_v24  ;;  %v1254_v37 = vld [vmem:[%s1829_s4] ss:$0 sm:$0xff] }
 0x111   :  { %v687_v52 = vsel %vm1615_vm12, %v1208_v12, %v686_v13  ;;  %v691_v53 = vsel %vm1615_vm12, %v1209_v32, %v690_v33  ;;  %v792_v59 = vor.u32 %v791_v43, %v790_v42  ;;  %v519_v61 = vsel %vm1597_vm8, %v514_v45, %v518_v46  ;;  %v1452_v12 = vld [vmem:[%s1828_s3 + $0x98] sm:$0xff]   ;;  %v1453_v13 = vld [vmem:[%s1830_s5] sm:$0xff]  }
 0x112   :  { %1385 = vmatpush3.bf16.msra.mxu0 %v1441_v41  ;;  %v528_v56 = vrot.slane %v527_v47, 4  ;;  %v787_v57 = vrot.slane %v786_v49, 4  ;;  %v1218_v60 = vcombine.low %v687_v52, %v691_v53  ;;  %v879_v62 = vsel %vm1632_vm15, %v1238_v19, %v878_v20 }
 0x113   :  { %1386 = vmatprep.subr.bf16.mxu0 %v1484_v1  ;;  %v883_v54 = vsel %vm1632_vm15, %v1239_v35, %v882_v44  ;;  %v783_v2 = vsel %vm1621_vm13, %v777_v48, %v782_v51 }
 0x114   :  { %v533_v63 = vsel %vm1597_vm8, %v528_v56, %v532_v50  ;;  %v793_v4 = vsel %vm1621_vm13, %v787_v57, %v792_v59  ;;  %v1248_v5 = vcombine.low %v879_v62, %v883_v54 }
 0x115   :  { %v1196_v6 = vcombine.low %v519_v61, %v533_v63  ;;  %v1232_v7 = vcombine.low %v783_v2, %v793_v4 }
 0x116   :  { %1387 = vmatpush3.bf16.msra.mxu0 %v1443_v55 }
 0x117   :  { %1355 = vmatmul.mubr.msk.bf16.vlgmr.msra.gmra.mrb[8].mxu1 %vm570_vm3, %v1196_v6  ;;  %1388 = vmatprep.subr.bf16.mxu0 %v1484_v1 }
 0x118   :  { %1371 = vmatpush3.bf16.msra.mxu1 %v1444_v0  ;;  %1378 = vmatprep.mubr.msk.bf16.mxu1 %vm1485_vm0, %v1484_v1 }
 0x119   :  { %1372 = vmatprep.subr.bf16.mxu1 %v1484_v1 }
 0x11a   :  { %1389 = vmatpush3.bf16.msra.mxu0 %v1445_v3 }
 0x11b   :  { %1406 = vmatprep.subr.bf16.mxu0 %v1484_v1 }
 0x11c   :  { %1373 = vmatpush3.bf16.msra.mxu1 %v1446_v40  ;;  %v1063_v40 = vld [vmem:[%s1832_s7] sm:$0xf]  ;;  %s1486_s7 = smov [#allocation2]  }
 0x11d   :  { %1391 = vmatmul.mubr.msk.bf16.vlgmr.msra.gmra.mrb[16].mxu0 %vm570_vm3, %v1232_v7  ;;  %1374 = vmatprep.subr.bf16.mxu1 %v1484_v1  ;;  %s1127_s11 = sshll.u32 %s1486_s7, 4  ;;  %s1128_s11 = int_to_ptr.vmem [resolvable:$true] %s1127_s11 }
 0x11e   :  { %1408 = vmatprep.mubr.msk.bf16.mxu0 %vm1485_vm0, %v1484_v1  ;;  %1407 = vmatpush3.bf16.msra.mxu0 %v1453_v13  ;;  %p1465_p1 = scmp.lt.s32.totalorder %s1128_s11, %s1128_s11 }
 0x11f   :  { %1412 = vmatprep.subr.bf16.mxu0 %v1484_v1 }
 0x120   :  { %1375 = vmatpush3.bf16.msra.mxu1 %v1447_v58  ;;  %v1077_v58 = vsel %vm1075_vm4, %v1063_v40, 0 }
 0x121   :  { %1376 = vmatprep.subr.bf16.mxu1 %v1484_v1 }
 0x124   :  { %1377 = vmatpush3.bf16.msra.mxu1 %v1448_v8  ;;  %v1255_v8 = vld [vmem:[%s1831_s6] ss:$0 sm:$0xff]  ;;  %s1460_s6 = scalar_lea.vmem %s1128_s11, 32 }
 0x125   :  { %1394 = vmatprep.subr.bf16.mxu1 %v1484_v1  ;;  %p1461_p0 = scmp.ne.s32.totalorder %s1128_s11, %s1460_s6  ;;  %p1466_p2 = scmp.lt.s32.totalorder %s1460_s6, %s1460_s6 }
 0x127   :  { %1379 = vmatmul.mubr.msk.bf16.vlgmr.msra.gmra.mrb[12].mxu1 %vm570_vm3, %v1218_v60  ;;  %p1467_p3 = por %p1466_p2, %p1465_p1 }
 0x128   :  { %1395 = vmatpush3.bf16.msra.mxu1 %v1449_v9  ;;  %1402 = vmatprep.mubr.msk.bf16.mxu1 %vm1485_vm0, %v1484_v1 }
 0x129   :  { %1396 = vmatprep.subr.bf16.mxu1 %v1484_v1  ;;  %p1468_p4 = pnand %p1467_p3, %p1461_p0 }
 0x12c   :  { %1397 = vmatpush3.bf16.msra.mxu1 %v1450_v10 }
 0x12d   :  { %1398 = vmatprep.subr.bf16.mxu1 %v1484_v1 }
 0x130   :  { %1399 = vmatpush3.bf16.msra.mxu1 %v1451_v11 }
 0x131   :  { %1400 = vmatprep.subr.bf16.mxu1 %v1484_v1 }
 0x134   :  { %1401 = vmatpush3.bf16.msra.mxu1 %v1452_v12 }
 0x137   :  { %1403 = vmatmul.mubr.msk.bf16.vlgmr.msra.gmra.mrb[16].mxu1 %vm570_vm3, %v1248_v5 }
 0x1e0   :  { %v677_v14 = vpop.f32.mrb[12].mxu0 }
 0x1e1   :  { %v1368_v15 = vpop.f32.mrb[13].mxu0 }
 0x1e2   :  { %v680_v16 = vpop.f32.mrb[14].mxu0  ;;  %v1258_v15 = vld [vmem:[%s1833_s8] ss:$0 sm:$0xff] }
 0x1e3   :  { %v1369_v17 = vpop.f32.mrb[15].mxu0 }
 0x1ea   :  { %v608_v18 = vpop.f32.mrb[8].mxu1 }
 0x1eb   :  { %v678_v19 = vadd.f32 %v677_v14, %v608_v18  ;;  %v1356_v20 = vpop.f32.mrb[9].mxu1 }
 0x1ec   :  { %v611_v21 = vpop.f32.mrb[10].mxu1 }
 0x1ed   :  { %v681_v22 = vadd.f32 %v680_v16, %v611_v21  ;;  %v1357_v23 = vpop.f32.mrb[11].mxu1 }
 0x1f0   :  { %v867_v24 = vpop.f32.mrb[16].mxu0 }
 0x1f1   :  { %v1392_v25 = vpop.f32.mrb[17].mxu0 }
 0x1f2   :  { %v870_v26 = vpop.f32.mrb[18].mxu0 }
 0x1f3   :  { %v1393_v27 = vpop.f32.mrb[19].mxu0 }
 0x1fa   :  { %v765_v28 = vpop.f32.mrb[12].mxu1 }
 0x1fb   :  { %v772_v29 = vadd.f32 %v765_v28, %v678_v19  ;;  %v1380_v30 = vpop.f32.mrb[13].mxu1 }
 0x1fc   :  { %v768_v31 = vpop.f32.mrb[14].mxu1 }
 0x1fd   :  { %v773_v32 = vadd.f32 %v768_v31, %v681_v22  ;;  %v1381_v33 = vpop.f32.mrb[15].mxu1  ;;  %v874_v34 = vadd.f32 %v867_v24, %v772_v29 }
 0x1ff   :  { %v875_v35 = vadd.f32 %v870_v26, %v773_v32 }
 0x20a   :  { %v957_v36 = vpop.f32.mrb[16].mxu1 }
 0x20b   :  { %v964_v38 = vadd.f32 %v957_v36, %v874_v34  ;;  %v1404_v39 = vpop.f32.mrb[17].mxu1 }
 0x20c   :  { %v960_v41 = vpop.f32.mrb[18].mxu1 }
 0x20d   :  { %v973_v42 = vadd.f32 %v1254_v37, %v964_v38  ;;  %v965_v43 = vadd.f32 %v960_v41, %v875_v35  ;;  %v1405_v44 = vpop.f32.mrb[19].mxu1 }
 0x20f   :  { %v975_v45 = vmax.f32 %v973_v42, 0.0  ;;  %v974_v46 = vadd.f32 %v1254_v37, %v965_v43 }
 0x211   :  { %v978_v47 = vsel %vm977_vm1, %v975_v45, -inf  ;;  %v976_v48 = vmax.f32 %v974_v46, 0.0 }
 0x212   :  { %v979_v49 = vrot.slane %v978_v47, 4 }
 0x213   :  { %v985_v50 = vsel %vm977_vm1, %v976_v48, -inf }
 0x214   :  { %v980_v51 = vmax.f32 %v978_v47, %v979_v49  ;;  %v986_v52 = vrot.slane %v985_v50, 4 }
 0x216   :  { %v981_v53 = vrot.slane %v980_v51, 2  ;;  %v987_v55 = vmax.f32 %v985_v50, %v986_v52 }
 0x218   :  { %v982_v56 = vmax.f32 %v980_v51, %v981_v53  ;;  %v988_v57 = vrot.slane %v987_v55, 2 }
 0x21a   :  { %v983_v59 = vrot.slane %v982_v56, 1  ;;  %v989_v60 = vmax.f32 %v987_v55, %v988_v57 }
 0x21c   :  { %v984_v61 = vmax.f32 %v982_v56, %v983_v59  ;;  %v990_v62 = vrot.slane %v989_v60, 1 }
 0x21e   :  { %1454 = vtanh.f32 %v984_v61  ;;  %v991_v54 = vmax.f32 %v989_v60, %v990_v62 }
 0x220   :  { %1456 = vtanh.f32 %v991_v54 }
 0x228   :  { %v1455_v63 = vpop.eup %1454 }
 0x229   :  { %v994_v0 = vpack.c.bf16 %v1455_v63, %v1455_v63 }
 0x22a   :  { %v1457_v2 = vpop.eup %1456 }
 0x22b   :  { %v995_v4 = vpack.c.bf16 %v1457_v2, %v1457_v2  ;;  %v1007_v5 = vunpack.c.l.b16 %v994_v0 }
 0x22d   :  { %v1008_v6 = vunpack.c.l.b16 %v995_v4 }
 0x22f   :  { %v1010_v7 = vsel %vm1009_vm2, %v1008_v6, %v1007_v5 }
 0x230   :  { %v1011_v3 = vpack.c.b16 %v1010_v7, %v1010_v7 }
 0x232   :  { %1409 = vmatmul.mubr.msk.bf16.vlgmr.msra.gmra.mrb[20].mxu0 %vm977_vm1, %v1011_v3 }
 0x233   :  { %1414 = vmatprep.mubr.msk.bf16.mxu0 %vm1485_vm0, %v1484_v1  ;;  %1413 = vmatpush3.bf16.msra.mxu0 %v1077_v58  ;;  %vm1119_vm0 = vcmask 25600  }
 0x305   :  { %v1055_v9 = vpop.f32.mrb[20].mxu0 }
 0x306   :  { %v1056_v10 = vadd.f32 %v1255_v8, %v1055_v9  ;;  %v1410_v11 = vpop.f32.mrb[21].mxu0 }
 0x307   :  { %v1058_v12 = vpop.f32.mrb[22].mxu0 }
 0x308   :  { %1458 = vtanh.f32 %v1056_v10  ;;  %v1411_v13 = vpop.f32.mrb[23].mxu0 }
 0x312   :  { %v1459_v14 = vpop.eup %1458 }
 0x313   :  { %v1062_v1 = vpack.c.bf16 %v1459_v14, %v1459_v14 }
 0x315   :  { %1415 = vmatmul.mubr.msk.bf16.vlgmr.msra.gmra.mrb[24].mxu0 %vm1071_vm5, %v1062_v1 }
 0x3e8   :  { %v1113_v16 = vpop.f32.mrb[24].mxu0 }
 0x3e9   :  { %v1114_v17 = vadd.f32 %v1258_v15, %v1113_v16  ;;  %v1416_v18 = vpop.f32.mrb[25].mxu0 }
 0x3ea   :  { %v1116_v19 = vpop.f32.mrb[26].mxu0 }
 0x3eb   :  { %v1417_v20 = vpop.f32.mrb[27].mxu0  ;;  %1120 = vst.msk [vmem:[#allocation2] sm:$0x3] %vm1119_vm0, %v1114_v17 }
 0x3ec   :  { %1471 = shalt.err (!%p1468_p4)
}
 0x3ed   :  { %s1472_s8 = scalar_lea.hbm %s1834_s9, 32 }
 0x3ee   :  { %p1473_p5 = scmp.ne.s32.totalorder %s1834_s9, %s1472_s8  ;;  %p1476_p6 = scmp.lt.u32.totalorder %s1472_s8, %s1834_s9 }
 0x3f0   :  { %p1478_p7 = pnand %p1476_p6, %p1473_p5 }
 0x3f2   :  { %1481 = shalt.err (!%p1478_p7)
}
 0x3f3   :  { %1130 = dma.vmem_to_hbm [thread:$0]  %s1128_s11, 32, %s1834_s9, [#allocation3]  }
 0x3f4   :  { %1482 = dma.done.wait [#allocation3], 32  }
 0x3f5   :  { %1483 = vsyncadd [#allocation3], 4294967264 }
 0x3f6   :  { %1134 = vsyncpa [#allocation3], 1 }

</bundles_post_ra>
